<compile_context>
chip_gen: v7x
topology: tpu7x:2x2x1
jax: 0.10.0
libtpu: 0.0.40
codegen_flags: <defaults>
</compile_context>

<pallas_src>
import functools

import jax
import jax.numpy as jnp
from jax.experimental import pallas as pl
from jax.experimental.pallas import tpu as pltpu

_PAIRWISE_EPS = 1e-6    # torch.nn.functional.pairwise_distance default eps
_MAX_TILE_ROWS = 8192   # bounds the (tn, 1) per-row f32 temporaries (lane-padded in VMEM)


def _round_up(x, m):
    return ((x + m - 1) // m) * m


def _vmem_capacity_bytes():
    """Per-core VMEM capacity; conservative (v7x) fallback if the query is unavailable."""
    try:
        info = pltpu.get_tpu_info()
        cap = getattr(info, "vmem_capacity_bytes", None)
        if cap:
            return int(cap)
    except Exception:
        pass
    return 64 << 20


def fusion_loss_kernel(o1_ref, o2_ref, label_ref, out_ref, *, n_rows, margin, need_mask):
    """o1_ref/o2_ref: (TN, D); label_ref: (1, TN) lane-dense; out_ref: (1, 1, 1) f32."""
    tn = o1_ref.shape[0]

    o1 = o1_ref[...].astype(jnp.float32)
    o2 = o2_ref[...].astype(jnp.float32)
    # Label arrives lane-dense (contiguous DMA, small VMEM footprint); relayout the
    # tn-length vector to a per-row column once on-chip.
    label = label_ref[...].astype(jnp.float32).reshape(tn, 1)

    diff = o1 - o2 + _PAIRWISE_EPS                               # torch adds eps to the difference
    sq_sum = jnp.sum(diff * diff, axis=-1, keepdims=True)        # (TN, 1) == d^2
    dist = jnp.sqrt(sq_sum)                                      # EUP; only feeds the hinge
    hinge = jnp.maximum(margin - dist, 0.0)                      # clamp(margin - d, min=0)
    contrib = (1.0 - label) * sq_sum + label * (hinge * hinge)   # (TN, 1)

    if need_mask:
        # Only emitted when n % tn != 0: zero out the padded rows of the ragged last tile.
        i = pl.program_id(0)
        row_id = jax.lax.broadcasted_iota(jnp.int32, (tn, 1), 0) + i * tn
        contrib = jnp.where(row_id < n_rows, contrib, 0.0)

    # Per-block partial sum; the final mean is a tiny tree-sum outside the kernel.
    out_ref[...] = jnp.sum(contrib).reshape(1, 1, 1)


def fusion_loss(output1, output2, label, *, margin=2.0, tile_rows=None, interpret=False):
    """output1, output2: (N, D); label: (N,). Returns scalar f32 loss."""
    n, d = output1.shape
    label_row = jnp.reshape(label, (1, n))                       # lane-dense; cast in-kernel
    itemsize = jnp.dtype(output1.dtype).itemsize
    lbl_itemsize = jnp.dtype(label.dtype).itemsize

    # --- generation-aware tile sizing -------------------------------------------------
    vmem_cap = _vmem_capacity_bytes()
    target_tile_bytes = (8 << 20) if vmem_cap >= (96 << 20) else (4 << 20)
    rows = max(1, target_tile_bytes // max(1, d * itemsize))
    rows = min(rows, _MAX_TILE_ROWS)
    if tile_rows is not None:
        rows = int(tile_rows)

    if n <= rows:
        tn = n                      # single tile: block shapes equal the full array dims
        need_mask = False
    else:
        # Multi-tile: tn must be a multiple of 128 so the (1, tn) label block is lane-legal
        # (and tn % 8 == 0 for the (tn, D) row blocks).
        tn = max(128, (rows // 128) * 128)
        need_mask = (n % tn) != 0
    grid_n = pl.cdiv(n, tn)

    # --- VMEM budget: 2 pipeline buffers x (2 input tiles + label tile) + f32 temps ----
    tile_bytes = tn * d * itemsize
    label_tile_bytes = 8 * _round_up(tn, 128) * lbl_itemsize     # (1, tn) pads sublanes to 8
    dense_tmp_bytes = 2 * tn * d * 4                             # (tn, D) f32 intermediates
    row_tmp_bytes = 3 * tn * 128 * 4                             # (tn, 1) f32 intermediates, lane-padded
    required = 2 * (2 * tile_bytes + label_tile_bytes) + dense_tmp_bytes + row_tmp_bytes + (2 << 20)
    vmem_limit = max(int(required * 1.25), 32 << 20)
    vmem_limit = min(vmem_limit, int(vmem_cap * 0.9))
    vmem_limit = max(vmem_limit, int(required * 1.1))            # never starve the pipeline

    kernel = functools.partial(
        fusion_loss_kernel, n_rows=n, margin=float(margin), need_mask=need_mask)

    partials = pl.pallas_call(
        kernel,
        out_shape=jax.ShapeDtypeStruct((grid_n, 1, 1), jnp.float32),
        grid_spec=pltpu.PrefetchScalarGridSpec(
            num_scalar_prefetch=0,
            grid=(grid_n,),
            in_specs=[
                pl.BlockSpec((tn, d), lambda i: (i, 0)),
                pl.BlockSpec((tn, d), lambda i: (i, 0)),
                pl.BlockSpec((1, tn), lambda i: (0, i)),         # lane-dense label row
            ],
            out_specs=pl.BlockSpec((1, 1, 1), lambda i: (i, 0, 0)),
        ),
        compiler_params=pltpu.CompilerParams(
            dimension_semantics=("parallel",),                   # independent per-block partials
            vmem_limit_bytes=vmem_limit,
        ),
        interpret=interpret,
    )(output1, output2, label_row)

    return jnp.sum(partials[:, 0, 0]) / jnp.float32(n)


def fusion_loss_ref(output1, output2, label, margin=2.0):
    """Pure-JAX reference matching the PyTorch forward."""
    diff = output1.astype(jnp.float32) - output2.astype(jnp.float32) + _PAIRWISE_EPS
    dist = jnp.sqrt(jnp.sum(diff * diff, axis=-1))
    hinge = jnp.maximum(margin - dist, 0.0)
    lbl = label.astype(jnp.float32)
    return jnp.mean((1.0 - lbl) * dist**2 + lbl * hinge**2)


if __name__ == "__main__":
    key = jax.random.PRNGKey(0)
    k1, k2, k3, k4, k5, k6 = jax.random.split(key, 6)

    # Case 1: small shapes matching the module's usage (single tile, no mask emitted).
    N, D = 8, 32
    output1 = jax.random.normal(k1, (N, D), dtype=jnp.float32)
    output2 = jax.random.normal(k2, (N, D), dtype=jnp.float32)
    label = jax.random.bernoulli(k3, p=0.5, shape=(N,)).astype(jnp.float32)

    loss = jax.block_until_ready(fusion_loss(output1, output2, label))
    ref = jax.block_until_ready(fusion_loss_ref(output1, output2, label))
    assert jnp.allclose(loss, ref, rtol=1e-5, atol=1e-5), (loss, ref)

    # Case 2: multi-tile "parallel" grid with a ragged last tile (exercises the lane-dense
    # label blocks, per-block partial sums, and the in-kernel row mask).
    N2, D2 = 300, 64
    o1b = jax.random.normal(k4, (N2, D2), dtype=jnp.float32)
    o2b = jax.random.normal(k5, (N2, D2), dtype=jnp.float32)
    labelb = jax.random.bernoulli(k6, p=0.5, shape=(N2,)).astype(jnp.float32)

    loss2 = jax.block_until_ready(fusion_loss(o1b, o2b, labelb, tile_rows=128))
    ref2 = jax.block_until_ready(fusion_loss_ref(o1b, o2b, labelb))
    assert jnp.allclose(loss2, ref2, rtol=1e-5, atol=1e-5), (loss2, ref2)

    print("KERNEL_OK")
</pallas_src>

<mosaic_0001>
module attributes {stable_mosaic.version = 11 : i64} {
  func.func @fusion_loss_kernel(%arg0: i32, %arg1: memref<8x32xf32, #tpu.memory_space<vmem>>, %arg2: memref<8x32xf32, #tpu.memory_space<vmem>>, %arg3: memref<1x8xf32, #tpu.memory_space<vmem>>, %arg4: memref<1x1x1xf32, #tpu.memory_space<vmem>>) attributes {dimension_semantics = [#tpu.dimension_semantics<parallel>], iteration_bounds = array<i64: 1>, scalar_prefetch = 0 : i64, scratch_operands = 0 : i64, tpu.core_type = #tpu.core_type<tc>, window_params = [{transform_indices = @transform_0, window_bounds = array<i64: 8, 32>}, {transform_indices = @transform_1, window_bounds = array<i64: 8, 32>}, {transform_indices = @transform_2, window_bounds = array<i64: 1, 8>}, {transform_indices = @transform_3, window_bounds = array<i64: 1, 1, 1>}]} {
    %c0 = arith.constant 0 : index
    %c0_0 = arith.constant 0 : index
    %0 = vector.load %arg1[%c0, %c0_0] : memref<8x32xf32, #tpu.memory_space<vmem>>, vector<8x32xf32>
    %c0_1 = arith.constant 0 : index
    %c0_2 = arith.constant 0 : index
    %1 = vector.load %arg2[%c0_1, %c0_2] : memref<8x32xf32, #tpu.memory_space<vmem>>, vector<8x32xf32>
    %c0_3 = arith.constant 0 : index
    %c0_4 = arith.constant 0 : index
    %2 = vector.load %arg3[%c0_3, %c0_4] : memref<1x8xf32, #tpu.memory_space<vmem>>, vector<1x8xf32>
    %3 = vector.shape_cast %2 : vector<1x8xf32> to vector<8x1xf32>
    %4 = arith.subf %0, %1 : vector<8x32xf32>
    %cst = arith.constant 9.99999997E-7 : f32
    %5 = vector.broadcast %cst : f32 to vector<8x32xf32>
    %6 = arith.addf %4, %5 : vector<8x32xf32>
    %7 = arith.mulf %6, %6 : vector<8x32xf32>
    %cst_5 = arith.constant dense<0.000000e+00> : vector<8xf32>
    %8 = vector.multi_reduction <add>, %7, %cst_5 [1] : vector<8x32xf32> to vector<8xf32>
    %9 = vector.shape_cast %8 : vector<8xf32> to vector<8x1xf32>
    %10 = math.sqrt %9 : vector<8x1xf32>
    %cst_6 = arith.constant 2.000000e+00 : f32
    %11 = vector.broadcast %cst_6 : f32 to vector<8x1xf32>
    %12 = arith.subf %11, %10 : vector<8x1xf32>
    %cst_7 = arith.constant 0.000000e+00 : f32
    %13 = vector.broadcast %cst_7 : f32 to vector<8x1xf32>
    %14 = arith.maximumf %12, %13 : vector<8x1xf32>
    %cst_8 = arith.constant 1.000000e+00 : f32
    %15 = vector.broadcast %cst_8 : f32 to vector<8x1xf32>
    %16 = arith.subf %15, %3 : vector<8x1xf32>
    %17 = arith.mulf %16, %9 : vector<8x1xf32>
    %18 = arith.mulf %14, %14 : vector<8x1xf32>
    %19 = arith.mulf %3, %18 : vector<8x1xf32>
    %20 = arith.addf %17, %19 : vector<8x1xf32>
    %21 = vector.shape_cast %20 : vector<8x1xf32> to vector<1x8x1xf32>
    %cst_9 = arith.constant dense<0.000000e+00> : vector<1xf32>
    %22 = vector.multi_reduction <add>, %21, %cst_9 [1, 2] : vector<1x8x1xf32> to vector<1xf32>
    %23 = vector.shape_cast %22 : vector<1xf32> to vector<1x1x1xf32>
    %24 = vector.extract %23[0, 0, 0] : f32 from vector<1x1x1xf32>
    %25 = vector.broadcast %24 : f32 to vector<1x1x1xf32>
    %c0_10 = arith.constant 0 : index
    %c0_11 = arith.constant 0 : index
    %c0_12 = arith.constant 0 : index
    %26 = vector.load %arg4[%c0_10, %c0_11, %c0_12] : memref<1x1x1xf32, #tpu.memory_space<vmem>>, vector<1x1x1xf32>
    tpu.vector_store %arg4[%c0_10, %c0_11, %c0_12], %25 {strides = array<i32>} : memref<1x1x1xf32, #tpu.memory_space<vmem>>, vector<1x1x1xf32>,
    return
  }
  func.func @transform_0(%arg0: i32) -> (i32, i32) {
    %c0_i32 = arith.constant 0 : i32
    %c0_i32_0 = arith.constant 0 : i32
    return %arg0, %c0_i32 : i32, i32
  }
  func.func @transform_1(%arg0: i32) -> (i32, i32) {
    %c0_i32 = arith.constant 0 : i32
    %c0_i32_0 = arith.constant 0 : i32
    return %arg0, %c0_i32 : i32, i32
  }
  func.func @transform_2(%arg0: i32) -> (i32, i32) {
    %c0_i32 = arith.constant 0 : i32
    %c0_i32_0 = arith.constant 0 : i32
    return %c0_i32, %arg0 : i32, i32
  }
  func.func @transform_3(%arg0: i32) -> (i32, i32, i32) {
    %c0_i32 = arith.constant 0 : i32
    %c0_i32_0 = arith.constant 0 : i32
    %c0_i32_1 = arith.constant 0 : i32
    return %arg0, %c0_i32, %c0_i32_0 : i32, i32, i32
  }
}

</mosaic_0001>

<bundles_post_ra>
// kernel: tpu_custom_call.1
= control target key start
LH: loop header
LB: loop body
LE: loop exit
PB: predicated region body
PF: predicated region fallthrough
CT: control target
= control target key end

     0   :  { %8 = vsyncpa [#allocation3], 0  ;;  %s242_s0 = inlined_call_operand.hbm [shape: f32[8,32], index: 0, kind: input, shape index: {}]   ;;  %s243_s1 = inlined_call_operand.hbm [shape: f32[8,32], index: 1, kind: input, shape index: {}]   ;;  %s244_s2 = inlined_call_operand.vmem [shape: f32[1,8], index: 2, kind: input, shape index: {}]   ;;  %s245_s3 = inlined_call_operand.hbm [shape: f32[1,1,1], index: 3, kind: output, shape index: {}]  }
   0x1   :  { %9 = vsyncpa [#allocation6], 0 }
   0x2   :  { %10 = vsyncpa [#allocation4], 0  ;;  %s180_s12 = smov [#allocation2]   ;;  %s181_s14 = smov [#allocation5]  }
   0x3   :  { %s17_s13 = sshll.u32 %s180_s12, 4  ;;  %s27_s15 = sshll.u32 %s181_s14, 4  ;;  %s18_s13 = int_to_ptr.vmem [resolvable:$true] %s17_s13  ;;  %s28_s15 = int_to_ptr.vmem [resolvable:$true] %s27_s15 }
   0x4   :  { %s108_s18 = scalar_lea.hbm %s242_s0, 128 }
   0x5   :  { %p109_p0 = scmp.ne.s32.totalorder %s242_s0, %s108_s18  ;;  %p112_p1 = scmp.lt.u32.totalorder %s108_s18, %s242_s0 }
   0x7   :  { %p114_p2 = pnand %p112_p1, %p109_p0 }
   0x9   :  { %117 = shalt.err (!%p114_p2)
}
   0xa   :  { %s118_s23 = scalar_lea.vmem %s18_s13, 128  ;;  %p123_p4 = scmp.lt.s32.totalorder %s18_s13, %s18_s13 }
   0xb   :  { %p119_p3 = scmp.ne.s32.totalorder %s18_s13, %s118_s23  ;;  %p124_p5 = scmp.lt.s32.totalorder %s118_s23, %s118_s23 }
   0xd   :  { %p125_p6 = por %p124_p5, %p123_p4 }
   0xf   :  { %p126_p7 = pnand %p125_p6, %p119_p3 }
  0x11   :  { %129 = shalt.err (!%p126_p7)
}
  0x12   :  { %20 = dma.hbm_to_vmem [thread:$0]  %s242_s0, 128, %s18_s13, [#allocation3]  }
  0x13   :  { %s130_s28 = scalar_lea.hbm %s243_s1, 128 }
  0x14   :  { %p131_p8 = scmp.ne.s32.totalorder %s243_s1, %s130_s28  ;;  %p134_p9 = scmp.lt.u32.totalorder %s130_s28, %s243_s1 }
  0x16   :  { %p136_p10 = pnand %p134_p9, %p131_p8 }
  0x18   :  { %139 = shalt.err (!%p136_p10)
}
  0x19   :  { %s140_s6 = scalar_lea.vmem %s28_s15, 128  ;;  %p145_p12 = scmp.lt.s32.totalorder %s28_s15, %s28_s15 }
  0x1a   :  { %p141_p11 = scmp.ne.s32.totalorder %s28_s15, %s140_s6  ;;  %p146_p13 = scmp.lt.s32.totalorder %s140_s6, %s140_s6 }
  0x1c   :  { %p147_p0 = por %p146_p13, %p145_p12 }
  0x1e   :  { %p148_p1 = pnand %p147_p0, %p141_p11 }
  0x20   :  { %151 = shalt.err (!%p148_p1)
}
  0x21   :  { %30 = dma.hbm_to_vmem [thread:$0]  %s243_s1, 128, %s28_s15, [#allocation6]  }
  0x22   :  { %174 = dma.done.wait [#allocation3], 128  }
  0x23   :  { %175 = vsyncadd [#allocation3], 4294967168 }
  0x24   :  { %176 = dma.done.wait [#allocation6], 128  }
  0x25   :  { %177 = vsyncadd [#allocation6], 4294967168  ;;  %v39_v0 = vld [vmem:[#allocation2] sm:$0xff]  ;;  %v40_v1 = vld [vmem:[#allocation5] sm:$0xff]  ;;  %vm52_vm0 = vcmask 261120   ;;  %vm70_vm3 = vcmask 7168  }
  0x26   :  { %v49_v2 = vsub.f32 %v39_v0, %v40_v1  ;;  %v100_v6 = vld [vmem:[%s244_s2] ss:$0 sm:$0xff]  ;;  %s182_s1 = smov [#allocation7]   ;;  %vm82_vm4 = vcmask 0  }
  0x27   :  { %s90_s2 = sshll.u32 %s182_s1, 4  ;;  %s91_s2 = int_to_ptr.vmem [resolvable:$true] %s90_s2 }
  0x28   :  { %v50_v3 = vadd.f32 1e-06, %v49_v2  ;;  %s152_s11 = scalar_lea.vmem %s91_s2, 16  ;;  %s156_s12 = scalar_lea.vmem %s91_s2, 32 }
  0x29   :  { %p153_p2 = scmp.ne.s32.totalorder %s91_s2, %s152_s11  ;;  %p157_p3 = scmp.lt.s32.totalorder %s91_s2, %s91_s2 }
  0x2a   :  { %v51_v4 = vmul.f32 %v50_v3, %v50_v3  ;;  %p158_p4 = scmp.lt.s32.totalorder %s156_s12, %s152_s11 }
  0x2c   :  { %v53_v5 = vsel %vm52_vm0, %v51_v4, 0.0  ;;  %p159_p5 = por %p158_p4, %p157_p3 }
  0x2d   :  { %54 = vadd.xlane.f32.xlu0 %v53_v5 }
  0x2e   :  { %p160_p6 = pnand %p159_p5, %p153_p2 }
  0x43   :  { %47 = vbcast.lane.b32.xlu0 %v100_v6, 256 }
  0xba   :  { %v55_v7 = vpop.xlane.xlu0 %54 }
  0xbb   :  { %106 = vrsqrt.f32 %v55_v7  ;;  %vm58_vm1 = vcmp.eq.f32.partialorder %v55_v7, inf  ;;  %v61_v10 = vand.u32 2147483648, %v55_v7  ;;  %vm60_vm2 = vcmp.eq.f32.partialorder %v55_v7, 0.0 }
  0xbe   :  { %v48_v13 = vpop.permute.xlu0 %47 }
  0xbf   :  { %v65_v16 = vsub.f32 1.0, %v48_v13 }
  0xc1   :  { %v66_v18 = vmul.f32 %v65_v16, %v55_v7 }
  0xc5   :  { %v107_v8 = vpop.eup %106 }
  0xc6   :  { %v57_v9 = vmul.f32 %v107_v8, %v55_v7 }
  0xc8   :  { %v59_v11 = vsel %vm58_vm1, %v55_v7, %v57_v9 }
  0xc9   :  { %v62_v12 = vsel %vm60_vm2, %v61_v10, %v59_v11 }
  0xca   :  { %v63_v14 = vsub.f32 2.0, %v62_v12 }
  0xcc   :  { %v64_v15 = vmax.f32 %v63_v14, 0.0 }
  0xce   :  { %v67_v17 = vmul.f32 %v64_v15, %v64_v15 }
  0xd0   :  { %v68_v19 = vmul.f32 %v67_v17, %v48_v13 }
  0xd2   :  { %v69_v20 = vadd.f32 %v68_v19, %v66_v18 }
  0xd4   :  { %v71_v21 = vsel %vm70_vm3, %v69_v20, 0.0 }
  0xd5   :  { %72 = vadd.xlane.f32.xlu1 %v71_v21 }
 0x162   :  { %v73_v22 = vpop.xlane.xlu1 %72 }
 0x163   :  { %v74_v23 = vrot.slane %v73_v22, 4 }
 0x165   :  { %v75_v24 = vadd.f32 %v74_v23, %v73_v22 }
 0x167   :  { %v76_v25 = vrot.slane %v75_v24, 2 }
 0x169   :  { %v77_v26 = vadd.f32 %v76_v25, %v75_v24 }
 0x16b   :  { %v78_v27 = vrot.slane %v77_v26, 1 }
 0x16d   :  { %v79_v28 = vadd.f32 %v78_v27, %v77_v26 }
 0x16f   :  { %101 = vpush %v79_v28 }
 0x1a0   :  { %s102_s10 = spop %101 }
 0x1a1   :  { %v81_v29 = vstv %s102_s10 }
 0x1a2   :  { %83 = vst.msk [vmem:[#allocation7] sm:$0x1] %vm82_vm4, %v81_v29 }
 0x1a3   :  { %163 = shalt.err (!%p160_p6)
}
 0x1a4   :  { %s164_s15 = scalar_lea.hbm %s245_s3, 16 }
 0x1a5   :  { %p165_p7 = scmp.ne.s32.totalorder %s245_s3, %s164_s15  ;;  %p168_p8 = scmp.lt.u32.totalorder %s164_s15, %s245_s3 }
 0x1a7   :  { %p170_p9 = pnand %p168_p8, %p165_p7 }
 0x1a9   :  { %173 = shalt.err (!%p170_p9)
}
 0x1aa   :  { %93 = dma.vmem_to_hbm [thread:$0]  %s91_s2, 16, %s245_s3, [#allocation4]  }
 0x1ab   :  { %178 = dma.done.wait [#allocation4], 16  }
 0x1ac   :  { %179 = vsyncadd [#allocation4], 4294967280 }
 0x1ad   :  { %97 = vsyncpa [#allocation3], 1 }
 0x1ae   :  { %98 = vsyncpa [#allocation6], 1 }
 0x1af   :  { %99 = vsyncpa [#allocation4], 1 }

</bundles_post_ra>
